<compile_context>
chip_gen: v6e
topology: v6e:2x2x1
jax: 0.10.0
libtpu: 0.0.40
codegen_flags: <defaults>
</compile_context>

<pallas_src>
import jax
import jax.numpy as jnp
from jax.experimental import pallas as pl
from jax.experimental.pallas import tpu as pltpu


def _hardswish_linear_kernel(x_ref, w_ref, b_ref, o_ref):
    # v1 = x_packed @ W_blockdiag + bias_tiled   (MXU; huge slack, kernel is mem-bound)
    v1 = jnp.dot(x_ref[...], w_ref[...], preferred_element_type=jnp.float32)
    v1 = v1 + b_ref[...]
    # v2 = v1 * clamp(v1 + 3, 0, 6) ; v3 = v2 / 6   (VPU elementwise, fused epilogue)
    relu6 = jnp.clip(v1 + 3.0, 0.0, 6.0)
    o_ref[...] = ((v1 * relu6) * (1.0 / 6.0)).astype(o_ref.dtype)


def _round_up(n, m):
    return ((n + m - 1) // m) * m


_PACK = 4             # logical rows packed per kernel row: 4*16=64 in-lanes, 4*32=128 out-lanes
_TILE_BP_MAX = 2048   # packed rows / step = 8192 logical rows; ~1.5 MB useful bytes per step


def model_forward(x, w, b):
    """x: (B, 16) f32, w: (16, 32) f32, b: (1, 32) f32 -> (B, 32) f32."""
    B, K = x.shape
    N = w.shape[1]

    # Pad the batch only to the next multiple of 8 (tiny) so 4-row packing works and
    # the sublane dim stays aligned.  No tile-multiple padding (review item 1).
    B8 = _round_up(max(B, 1), 8)
    if B8 != B:
        x = jnp.pad(x, ((0, B8 - B), (0, 0)))
    Bp = B8 // _PACK  # packed rows (always even)

    # Lane-dense repack (review item 3):
    #   x_packed[i, 16*j:16*(j+1)] = x[4*i + j, :]
    #   W_bd = kron(I_4, W)  -> (64, 128) block-diagonal, stays resident in VMEM
    #   b_t  = tile(b, 4)    -> (1, 128)
    x_packed = x.reshape(Bp, _PACK * K)                      # (Bp, 64)
    w_bd = jnp.kron(jnp.eye(_PACK, dtype=w.dtype), w)        # (64, 128)
    b_t = jnp.tile(b.reshape(1, N), (1, _PACK))              # (1, 128)

    # Tile selection: single full-extent block for tiny batches; otherwise a large
    # tile capped so the grid has >= 2 steps (v7x two-TC split, review item 4).
    if Bp <= 16:
        tile_bp = Bp
    else:
        tile_bp = min(_TILE_BP_MAX, _round_up(pl.cdiv(Bp, 2), 8))
    grid = (pl.cdiv(Bp, tile_bp),)

    Kp, Np = _PACK * K, _PACK * N
    cost = pl.CostEstimate(
        flops=2 * Bp * Kp * Np,
        transcendentals=0,
        bytes_accessed=Bp * Kp * 4 + Bp * Np * 4 + Kp * Np * 4 + Np * 4,
    )

    out_packed = pl.pallas_call(
        _hardswish_linear_kernel,
        out_shape=jax.ShapeDtypeStruct((Bp, Np), jnp.float32),
        grid=grid,
        in_specs=[
            pl.BlockSpec((tile_bp, Kp), lambda i: (i, 0)),   # x_packed: batch-tiled
            pl.BlockSpec((Kp, Np), lambda i: (0, 0)),        # W_bd: resident, constant block
            pl.BlockSpec((1, Np), lambda i: (0, 0)),         # bias: resident, constant block
        ],
        out_specs=pl.BlockSpec((tile_bp, Np), lambda i: (i, 0)),
        compiler_params=pltpu.CompilerParams(
            dimension_semantics=("parallel",),  # lets v7x's 2 TCs split the batch grid
        ),
        cost_estimate=cost,
    )(x_packed, w_bd, b_t)

    # Free row-major un-pack: (Bp, 128) -> (B8, 32), then drop the tiny batch pad.
    out = out_packed.reshape(B8, N)
    return out[:B] if B8 != B else out


def reference_forward(x, w, b):
    v1 = x @ w + b
    return v1 * jnp.clip(v1 + 3.0, 0.0, 6.0) / 6.0


if __name__ == "__main__":
    key = jax.random.PRNGKey(0)
    k_x, k_w, k_b, k_x2 = jax.random.split(key, 4)

    in_features, out_features = 16, 32

    # Deterministic parameter init (synthetic; mimics Linear's uniform init range).
    bound = 1.0 / (in_features ** 0.5)
    w = jax.random.uniform(k_w, (in_features, out_features), jnp.float32, -bound, bound)
    b = jax.random.uniform(k_b, (1, out_features), jnp.float32, -bound, bound)

    # Shapes consistent with the module's (batch, 16) input.
    x_a = jax.random.normal(k_x, (1, in_features), jnp.float32)     # the spec's (1, 16) input
    x_b = jax.random.normal(k_x2, (123, in_features), jnp.float32)  # exercises pad/pack + 2-step grid

    out_a = jax.block_until_ready(model_forward(x_a, w, b))
    out_b = jax.block_until_ready(model_forward(x_b, w, b))

    ref_a = reference_forward(x_a, w, b)
    ref_b = reference_forward(x_b, w, b)

    assert out_a.shape == (1, out_features)
    assert out_b.shape == (123, out_features)
    assert jnp.allclose(out_a, ref_a, atol=1e-5, rtol=1e-5)
    assert jnp.allclose(out_b, ref_b, atol=1e-5, rtol=1e-5)

    print("KERNEL_OK")
</pallas_src>

<mosaic_0001>
module attributes {stable_mosaic.version = 11 : i64} {
  func.func @_hardswish_linear_kernel(%arg0: i32, %arg1: memref<2x64xf32, #tpu.memory_space<vmem>>, %arg2: memref<64x128xf32, #tpu.memory_space<vmem>>, %arg3: memref<1x128xf32, #tpu.memory_space<vmem>>, %arg4: memref<2x128xf32, #tpu.memory_space<vmem>>) attributes {dimension_semantics = [#tpu.dimension_semantics<parallel>], iteration_bounds = array<i64: 1>, scalar_prefetch = 0 : i64, scratch_operands = 0 : i64, tpu.core_type = #tpu.core_type<tc>, window_params = [{transform_indices = @transform_0, window_bounds = array<i64: 2, 64>}, {pipeline_mode = #tpu.pipeline_mode<synchronous>, transform_indices = @transform_1, window_bounds = array<i64: 64, 128>}, {pipeline_mode = #tpu.pipeline_mode<synchronous>, transform_indices = @transform_2, window_bounds = array<i64: 1, 128>}, {transform_indices = @transform_3, window_bounds = array<i64: 2, 128>}]} {
    %c0 = arith.constant 0 : index
    %c0_0 = arith.constant 0 : index
    %0 = vector.load %arg1[%c0, %c0_0] : memref<2x64xf32, #tpu.memory_space<vmem>>, vector<2x64xf32>
    %c0_1 = arith.constant 0 : index
    %c0_2 = arith.constant 0 : index
    %1 = vector.load %arg2[%c0_1, %c0_2] : memref<64x128xf32, #tpu.memory_space<vmem>>, vector<64x128xf32>
    %cst = arith.constant dense<0.000000e+00> : vector<2x128xf32>
    %2 = tpu.matmul %0, %1, %cst {dimension_numbers = #tpu.dot_dimension_numbers<[1], [0], [0], [1], [0, 0, 1, 1], [], []>} : vector<2x64xf32>, vector<64x128xf32>, vector<2x128xf32> -> vector<2x128xf32>
    %c0_3 = arith.constant 0 : index
    %c0_4 = arith.constant 0 : index
    %3 = vector.load %arg3[%c0_3, %c0_4] : memref<1x128xf32, #tpu.memory_space<vmem>>, vector<1x128xf32>
    %4 = vector.broadcast %3 : vector<1x128xf32> to vector<2x128xf32>
    %5 = arith.addf %2, %4 : vector<2x128xf32>
    %cst_5 = arith.constant 3.000000e+00 : f32
    %6 = vector.broadcast %cst_5 : f32 to vector<2x128xf32>
    %7 = arith.addf %5, %6 : vector<2x128xf32>
    %cst_6 = arith.constant 0.000000e+00 : f32
    %cst_7 = arith.constant 6.000000e+00 : f32
    %8 = vector.broadcast %cst_6 : f32 to vector<2x128xf32>
    %9 = arith.maximumf %8, %7 : vector<2x128xf32>
    %10 = vector.broadcast %cst_7 : f32 to vector<2x128xf32>
    %11 = arith.minimumf %10, %9 : vector<2x128xf32>
    %12 = arith.mulf %5, %11 : vector<2x128xf32>
    %cst_8 = arith.constant 0.166666672 : f32
    %13 = vector.broadcast %cst_8 : f32 to vector<2x128xf32>
    %14 = arith.mulf %12, %13 : vector<2x128xf32>
    %c0_9 = arith.constant 0 : index
    %c0_10 = arith.constant 0 : index
    %15 = vector.load %arg4[%c0_9, %c0_10] : memref<2x128xf32, #tpu.memory_space<vmem>>, vector<2x128xf32>
    tpu.vector_store %arg4[%c0_9, %c0_10], %14 {strides = array<i32>} : memref<2x128xf32, #tpu.memory_space<vmem>>, vector<2x128xf32>,
    return
  }
  func.func @transform_0(%arg0: i32) -> (i32, i32) {
    %c0_i32 = arith.constant 0 : i32
    %c0_i32_0 = arith.constant 0 : i32
    return %arg0, %c0_i32 : i32, i32
  }
  func.func @transform_1(%arg0: i32) -> (i32, i32) {
    %c0_i32 = arith.constant 0 : i32
    %c0_i32_0 = arith.constant 0 : i32
    %c0_i32_1 = arith.constant 0 : i32
    return %c0_i32, %c0_i32_0 : i32, i32
  }
  func.func @transform_2(%arg0: i32) -> (i32, i32) {
    %c0_i32 = arith.constant 0 : i32
    %c0_i32_0 = arith.constant 0 : i32
    %c0_i32_1 = arith.constant 0 : i32
    return %c0_i32, %c0_i32_0 : i32, i32
  }
  func.func @transform_3(%arg0: i32) -> (i32, i32) {
    %c0_i32 = arith.constant 0 : i32
    %c0_i32_0 = arith.constant 0 : i32
    return %arg0, %c0_i32 : i32, i32
  }
}

</mosaic_0001>

<bundles_post_ra>
// kernel: tpu_custom_call.1
= control target key start
LH: loop header
LB: loop body
LE: loop exit
PB: predicated region body
PF: predicated region fallthrough
CT: control target
= control target key end

     0   :  { %8 = vsyncpa [#allocation3], 0  ;;  %s295_s0 = inlined_call_operand.hbm [shape: f32[2,64], index: 0, kind: input, shape index: {}]   ;;  %s296_s1 = inlined_call_operand.hbm [shape: f32[64,128], index: 1, kind: input, shape index: {}]   ;;  %s297_s2 = inlined_call_operand.vmem [shape: f32[1,128], index: 2, kind: input, shape index: {}]   ;;  %s298_s3 = inlined_call_operand.hbm [shape: f32[2,128], index: 3, kind: output, shape index: {}]  }
   0x1   :  { %9 = vsyncpa [#allocation6], 0 }
   0x2   :  { %10 = vsyncpa [#allocation4], 0  ;;  %s256_s12 = smov [#allocation2]   ;;  %s257_s14 = smov [#allocation5]  }
   0x3   :  { %s17_s13 = sshll.u32 %s256_s12, 4  ;;  %s26_s15 = sshll.u32 %s257_s14, 4  ;;  %s18_s13 = int_to_ptr.vmem [resolvable:$true] %s17_s13  ;;  %s27_s15 = int_to_ptr.vmem [resolvable:$true] %s26_s15 }
   0x4   :  { %s198_s16 = scalar_lea.vmem %s18_s13, 32  ;;  %p203_p1 = scmp.lt.s32.totalorder %s18_s13, %s18_s13 }
   0x5   :  { %p199_p0 = scmp.ne.s32.totalorder %s18_s13, %s198_s16  ;;  %p204_p2 = scmp.lt.s32.totalorder %s198_s16, %s198_s16 }
   0x7   :  { %p205_p3 = por %p204_p2, %p203_p1 }
   0x9   :  { %p206_p4 = pnand %p205_p3, %p199_p0 }
   0xb   :  { %209 = shalt.err (!%p206_p4)
}
   0xc   :  { %20 = dma.hbm_to_vmem [thread:$0]  %s295_s0, 32, %s18_s13, [#allocation3]  }
   0xd   :  { %s218_s19 = scalar_lea.vmem %s27_s15, 1024  ;;  %p223_p6 = scmp.lt.s32.totalorder %s27_s15, %s27_s15 }
   0xe   :  { %p219_p5 = scmp.ne.s32.totalorder %s27_s15, %s218_s19  ;;  %p224_p7 = scmp.lt.s32.totalorder %s218_s19, %s218_s19 }
  0x10   :  { %p225_p8 = por %p224_p7, %p223_p6 }
  0x12   :  { %p226_p9 = pnand %p225_p8, %p219_p5 }
  0x14   :  { %229 = shalt.err (!%p226_p9)
}
  0x15   :  { %s258_s20 = smov 128   ;;  %s259_s21 = smov 8  }
  0x16   :  { %32 = dma.hbm_to_vmem [thread:$0]  %s296_s1, 1024, %s27_s15, [#allocation6], %s258_s20, %s258_s20, %s259_s21  }
  0x17   :  { %250 = dma.done.wait [#allocation3], 32  }
  0x18   :  { %251 = vsyncadd [#allocation3], 4294967264 }
  0x19   :  { %252 = dma.done.wait [#allocation6], 1024  }
  0x1a   :  { %253 = vsyncadd [#allocation6], 4294966272  ;;  %v260_v0 = vmov 0.0   ;;  %vm261_vm0 = vmmov 0   ;;  %v49_v1 = vld [vmem:[#allocation5 + $0x38] sm:$0xff]  ;;  %v48_v2 = vld [vmem:[#allocation5 + $0x30] sm:$0xff] }
  0x1b   :  { %164 = vmatprep.subr.mxu0 %v260_v0  ;;  %180 = vmatprep.mubr.msk.f32.mxu0 %vm261_vm0, %v260_v0  ;;  %v47_v3 = vld [vmem:[#allocation5 + $0x28] sm:$0xff]  ;;  %v46_v4 = vld [vmem:[#allocation5 + $0x20] sm:$0xff]  ;;  %v45_v5 = vld [vmem:[#allocation5 + $0x18] sm:$0xff]  ;;  %vm57_vm1 = vcmask 523264   ;;  %s262_s24 = smov [#allocation7]  }
  0x1c   :  { %165 = vmatpush3.msra.mxu0 %v49_v1  ;;  %v44_v6 = vld [vmem:[#allocation5 + $0x10] sm:$0xff]  ;;  %v43_v7 = vld [vmem:[#allocation5 + $0x8] sm:$0xff]  ;;  %v42_v8 = vld [vmem:[#allocation5] sm:$0xff]  ;;  %s143_s25 = sshll.u32 %s262_s24, 4  ;;  %s144_s25 = int_to_ptr.vmem [resolvable:$true] %s143_s25 }
  0x1d   :  { %166 = vmatprep.subr.mxu0 %v260_v0  ;;  %v41_v9 = vld [vmem:[#allocation2] sm:$0x3]  ;;  %s230_s26 = scalar_lea.vmem %s144_s25, 32  ;;  %p235_p11 = scmp.lt.s32.totalorder %s144_s25, %s144_s25 }
  0x1e   :  { %167 = vmatpush3.msra.mxu0 %v48_v2  ;;  %v153_v10 = vld [vmem:[%s297_s2] ss:$0 sm:$0xff]  ;;  %p231_p10 = scmp.ne.s32.totalorder %s144_s25, %s230_s26  ;;  %p236_p12 = scmp.lt.s32.totalorder %s230_s26, %s230_s26 }
  0x1f   :  { %168 = vmatprep.subr.mxu0 %v260_v0 }
  0x20   :  { %169 = vmatpush3.msra.mxu0 %v47_v3  ;;  %p237_p13 = por %p236_p12, %p235_p11 }
  0x21   :  { %170 = vmatprep.subr.mxu0 %v260_v0 }
  0x22   :  { %171 = vmatpush3.msra.mxu0 %v46_v4  ;;  %p238_p0 = pnand %p237_p13, %p231_p10 }
  0x23   :  { %172 = vmatprep.subr.mxu0 %v260_v0 }
  0x24   :  { %173 = vmatpush3.msra.mxu0 %v45_v5 }
  0x25   :  { %174 = vmatprep.subr.mxu0 %v260_v0 }
  0x26   :  { %175 = vmatpush3.msra.mxu0 %v44_v6 }
  0x27   :  { %176 = vmatprep.subr.mxu0 %v260_v0 }
  0x28   :  { %177 = vmatpush3.msra.mxu0 %v43_v7 }
  0x29   :  { %178 = vmatprep.subr.mxu0 %v260_v0 }
  0x2a   :  { %179 = vmatpush3.msra.mxu0 %v42_v8 }
  0x2b   :  { %181 = vmatmul.mubr.msk.f32.vlgmr.msra.gmra.mxu0 %vm57_vm1, %v41_v9 }
  0xeb   :  { %v127_v11 = vpop.f32.mrf.mxu0 }
  0xec   :  { %v128_v12 = vadd.f32 %v153_v10, %v127_v11 }
  0xed   :  { %v182_v13 = vpop.f32.mrf.mxu0 }
  0xee   :  { %v131_v14 = vadd.f32 3.0, %v128_v12 }
  0xf0   :  { %v132_v15 = vmax.f32 %v131_v14, 0.0 }
  0xf2   :  { %v133_v16 = vmin.f32 %v132_v15, 6.0 }
  0xf4   :  { %v134_v17 = vmul.f32 %v133_v16, %v128_v12 }
  0xf6   :  { %v135_v18 = vmul.f32 0.16666667, %v134_v17 }
  0xf8   :  { %136 = vst [vmem:[#allocation7] sm:$0x3] %v135_v18 }
  0xf9   :  { %241 = shalt.err (!%p238_p0)
}
  0xfa   :  { %146 = dma.vmem_to_hbm [thread:$0]  %s144_s25, 32, %s298_s3, [#allocation4]  }
  0xfb   :  { %254 = dma.done.wait [#allocation4], 32  }
  0xfc   :  { %255 = vsyncadd [#allocation4], 4294967264 }
  0xfd   :  { %150 = vsyncpa [#allocation3], 1 }
  0xfe   :  { %151 = vsyncpa [#allocation6], 1 }
  0xff   :  { %152 = vsyncpa [#allocation4], 1 }

</bundles_post_ra>
